<compile_context>
chip_gen: v7x
topology: tpu7x:2x2x1
jax: 0.10.0
libtpu: 0.0.40
codegen_flags: <defaults>
</compile_context>

<pallas_src>
import jax
import jax.numpy as jnp
from jax.experimental import pallas as pl
from jax.experimental.pallas import tpu as pltpu


def _round_up(x, m):
    return (x + m - 1) // m * m


def _stack_scores_kernel(*refs):
    """refs = (s_0, ..., s_{M-1}, out); s_m block: [TB, L]; out block: [M, TB, L]."""
    *in_refs, out_ref = refs
    for m, s_ref in enumerate(in_refs):
        # Full (TB, L) slab store per model: unmasked, (8,128)-aligned.
        out_ref[m] = s_ref[...]


def _choose_batch_tile(batch, list_len, model_num, itemsize,
                       vmem_budget_bytes=16 * 1024 * 1024, max_tile=1024):
    """Largest multiple-of-8 batch tile whose double-buffered blocks fit the budget.

    Per grid step: M input blocks + one (M-row) output block, each double-buffered
    -> 2 * (M + M) * TB * L * itemsize bytes.  16 MiB keeps headroom under the
    32 MiB default scoped VMEM limit (and v7x's 64 MiB physical VMEM).
    """
    bytes_per_row = 2 * (model_num + model_num) * list_len * itemsize
    tb = vmem_budget_bytes // max(bytes_per_row, 1)
    tb = max(8, (min(max_tile, tb) // 8) * 8)
    return min(tb, _round_up(batch, 8))


def stack_basic_scores(score_list):
    """Reproduce torch.stack(basic_scores, dim=2).

    Args:
      score_list: list of M arrays, each [B, L], same dtype.
    Returns:
      [B, L, M] array.
    """
    model_num = len(score_list)
    s0 = score_list[0]
    batch, list_len = s0.shape
    dtype = s0.dtype
    for s in score_list:
        if s.shape != (batch, list_len) or s.dtype != dtype:
            raise ValueError("all basic score arrays must share shape and dtype")

    itemsize = jnp.dtype(dtype).itemsize
    tb = _choose_batch_tile(batch, list_len, model_num, itemsize)
    b_pad = _round_up(batch, tb)
    if b_pad != batch:
        score_list = [jnp.pad(s, ((0, b_pad - batch), (0, 0))) for s in score_list]

    out_mbl = pl.pallas_call(
        _stack_scores_kernel,
        out_shape=jax.ShapeDtypeStruct((model_num, b_pad, list_len), dtype),
        grid_spec=pltpu.PrefetchScalarGridSpec(
            num_scalar_prefetch=0,
            grid=(b_pad // tb,),
            in_specs=[
                pl.BlockSpec((tb, list_len), lambda i: (i, 0))
                for _ in range(model_num)
            ],
            out_specs=pl.BlockSpec(
                (model_num, tb, list_len), lambda i: (0, i, 0)
            ),
        ),
        compiler_params=pltpu.CompilerParams(
            dimension_semantics=("parallel",),
        ),
    )(*score_list)

    # Glue: (M, B, L) -> (B, L, M) to match torch.stack(..., dim=2); XLA fuses
    # the trailing slice into this single transpose pass.
    out = jnp.transpose(out_mbl, (1, 2, 0))
    if b_pad != batch:
        out = out[:batch]
    return out


class BaseModelJax:
    """JAX/Pallas counterpart of BaseModel.

    BaseModel declares no parameters in __init__ (only bookkeeping attrs), so
    there is nothing to initialize; init_weights would only touch Linear /
    Embedding submodules of subclasses.
    """

    def __init__(self, model_num: int = 2, intent_num: int = 4):
        self.model_num = model_num
        self.intent_num = intent_num

    def collate_scores(self, basic_scores):
        # Dataset.collate_batch hot path: torch.stack(basic_scores, dim=2).
        return stack_basic_scores(basic_scores)

    def forward(self, data):
        # Abstract in the reference module (body is `pass`) -> returns None.
        return None


if __name__ == "__main__":
    key = jax.random.PRNGKey(0)
    batch = 2          # batch_size
    list_len = 16      # padded item-list length per interaction
    model_num = 2      # --model_num default

    model = BaseModelJax(model_num=model_num, intent_num=4)

    keys = jax.random.split(key, model_num)
    basic_scores = [
        jax.random.normal(keys[m], (batch, list_len), dtype=jnp.float32)
        for m in range(model_num)
    ]

    scores = model.collate_scores(basic_scores)   # [B, L, M]
    scores = jax.block_until_ready(scores)

    # Correctness check against the plain-JAX reference of torch.stack(dim=2).
    ref = jnp.stack(basic_scores, axis=2)
    assert scores.shape == (batch, list_len, model_num)
    assert jnp.allclose(scores, ref), "mismatch vs reference stack"

    # forward is abstract -> None, matching the PyTorch module.
    assert model.forward({"scores": scores, "batch_size": batch}) is None

    print("KERNEL_OK")
</pallas_src>

<mosaic_0001>
module attributes {stable_mosaic.version = 11 : i64} {
  func.func @_stack_scores_kernel(%arg0: i32, %arg1: memref<8x16xf32, #tpu.memory_space<vmem>>, %arg2: memref<8x16xf32, #tpu.memory_space<vmem>>, %arg3: memref<2x8x16xf32, #tpu.memory_space<vmem>>) attributes {dimension_semantics = [#tpu.dimension_semantics<parallel>], iteration_bounds = array<i64: 1>, scalar_prefetch = 0 : i64, scratch_operands = 0 : i64, tpu.core_type = #tpu.core_type<tc>, window_params = [{transform_indices = @transform_0, window_bounds = array<i64: 8, 16>}, {transform_indices = @transform_1, window_bounds = array<i64: 8, 16>}, {transform_indices = @transform_2, window_bounds = array<i64: 2, 8, 16>}]} {
    %c0 = arith.constant 0 : index
    %c0_0 = arith.constant 0 : index
    %0 = vector.load %arg1[%c0, %c0_0] : memref<8x16xf32, #tpu.memory_space<vmem>>, vector<8x16xf32>
    %c0_1 = arith.constant 0 : index
    %c0_2 = arith.constant 0 : index
    %c0_3 = arith.constant 0 : index
    %1 = vector.load %arg3[%c0_1, %c0_2, %c0_3] : memref<2x8x16xf32, #tpu.memory_space<vmem>>, vector<1x8x16xf32>
    %2 = vector.shape_cast %1 : vector<1x8x16xf32> to vector<8x16xf32>
    %3 = vector.shape_cast %0 : vector<8x16xf32> to vector<1x8x16xf32>
    tpu.vector_store %arg3[%c0_1, %c0_2, %c0_3], %3 {strides = array<i32>} : memref<2x8x16xf32, #tpu.memory_space<vmem>>, vector<1x8x16xf32>,
    %c0_4 = arith.constant 0 : index
    %c0_5 = arith.constant 0 : index
    %4 = vector.load %arg2[%c0_4, %c0_5] : memref<8x16xf32, #tpu.memory_space<vmem>>, vector<8x16xf32>
    %c1 = arith.constant 1 : index
    %c0_6 = arith.constant 0 : index
    %c0_7 = arith.constant 0 : index
    %5 = vector.load %arg3[%c1, %c0_6, %c0_7] : memref<2x8x16xf32, #tpu.memory_space<vmem>>, vector<1x8x16xf32>
    %6 = vector.shape_cast %5 : vector<1x8x16xf32> to vector<8x16xf32>
    %7 = vector.shape_cast %4 : vector<8x16xf32> to vector<1x8x16xf32>
    tpu.vector_store %arg3[%c1, %c0_6, %c0_7], %7 {strides = array<i32>} : memref<2x8x16xf32, #tpu.memory_space<vmem>>, vector<1x8x16xf32>,
    return
  }
  func.func @transform_0(%arg0: i32) -> (i32, i32) {
    %c0_i32 = arith.constant 0 : i32
    %c0_i32_0 = arith.constant 0 : i32
    return %arg0, %c0_i32 : i32, i32
  }
  func.func @transform_1(%arg0: i32) -> (i32, i32) {
    %c0_i32 = arith.constant 0 : i32
    %c0_i32_0 = arith.constant 0 : i32
    return %arg0, %c0_i32 : i32, i32
  }
  func.func @transform_2(%arg0: i32) -> (i32, i32, i32) {
    %c0_i32 = arith.constant 0 : i32
    %c0_i32_0 = arith.constant 0 : i32
    %c0_i32_1 = arith.constant 0 : i32
    return %c0_i32, %arg0, %c0_i32_0 : i32, i32, i32
  }
}

</mosaic_0001>

<bundles_post_ra>
// kernel: tpu_custom_call.1
= control target key start
LH: loop header
LB: loop body
LE: loop exit
PB: predicated region body
PF: predicated region fallthrough
CT: control target
= control target key end

     0   :  { %7 = vsyncpa [#allocation3], 0  ;;  %s193_s0 = inlined_call_operand.hbm [shape: f32[8,16], index: 0, kind: input, shape index: {}]   ;;  %s194_s1 = inlined_call_operand.hbm [shape: f32[8,16], index: 1, kind: input, shape index: {}]   ;;  %s195_s2 = inlined_call_operand.hbm [shape: f32[2,8,16], index: 2, kind: output, shape index: {}]  }
   0x1   :  { %8 = vsyncpa [#allocation6], 0 }
   0x2   :  { %9 = vsyncpa [#allocation4], 0  ;;  %s137_s9 = smov [#allocation2]   ;;  %s138_s11 = smov [#allocation5]  }
   0x3   :  { %s16_s10 = sshll.u32 %s137_s9, 4  ;;  %s26_s12 = sshll.u32 %s138_s11, 4  ;;  %s17_s10 = int_to_ptr.vmem [resolvable:$true] %s16_s10  ;;  %s27_s12 = int_to_ptr.vmem [resolvable:$true] %s26_s12 }
   0x4   :  { %s65_s15 = scalar_lea.hbm %s193_s0, 128 }
   0x5   :  { %p66_p0 = scmp.ne.s32.totalorder %s193_s0, %s65_s15  ;;  %p69_p1 = scmp.lt.u32.totalorder %s65_s15, %s193_s0 }
   0x7   :  { %p71_p2 = pnand %p69_p1, %p66_p0 }
   0x9   :  { %74 = shalt.err (!%p71_p2)
}
   0xa   :  { %s75_s20 = scalar_lea.vmem %s17_s10, 128  ;;  %p80_p4 = scmp.lt.s32.totalorder %s17_s10, %s17_s10 }
   0xb   :  { %p76_p3 = scmp.ne.s32.totalorder %s17_s10, %s75_s20  ;;  %p81_p5 = scmp.lt.s32.totalorder %s75_s20, %s75_s20 }
   0xd   :  { %p82_p6 = por %p81_p5, %p80_p4 }
   0xf   :  { %p83_p7 = pnand %p82_p6, %p76_p3 }
  0x11   :  { %86 = shalt.err (!%p83_p7)
}
  0x12   :  { %19 = dma.hbm_to_vmem [thread:$0]  %s193_s0, 128, %s17_s10, [#allocation3]  }
  0x13   :  { %s87_s25 = scalar_lea.hbm %s194_s1, 128 }
  0x14   :  { %p88_p8 = scmp.ne.s32.totalorder %s194_s1, %s87_s25  ;;  %p91_p9 = scmp.lt.u32.totalorder %s87_s25, %s194_s1 }
  0x16   :  { %p93_p10 = pnand %p91_p9, %p88_p8 }
  0x18   :  { %96 = shalt.err (!%p93_p10)
}
  0x19   :  { %s97_s30 = scalar_lea.vmem %s27_s12, 128  ;;  %p102_p12 = scmp.lt.s32.totalorder %s27_s12, %s27_s12 }
  0x1a   :  { %p98_p11 = scmp.ne.s32.totalorder %s27_s12, %s97_s30  ;;  %p103_p13 = scmp.lt.s32.totalorder %s97_s30, %s97_s30 }
  0x1c   :  { %p104_p0 = por %p103_p13, %p102_p12 }
  0x1e   :  { %p105_p1 = pnand %p104_p0, %p98_p11 }
  0x20   :  { %108 = shalt.err (!%p105_p1)
}
  0x21   :  { %29 = dma.hbm_to_vmem [thread:$0]  %s194_s1, 128, %s27_s12, [#allocation6]  }
  0x22   :  { %131 = dma.done.wait [#allocation3], 128  }
  0x23   :  { %132 = vsyncadd [#allocation3], 4294967168 }
  0x24   :  { %133 = dma.done.wait [#allocation6], 128  }
  0x25   :  { %134 = vsyncadd [#allocation6], 4294967168  ;;  %s139_s4 = smov [#allocation7]   ;;  %vm37_vm0 = vcmask 130048   ;;  %v36_v0 = vld [vmem:[#allocation2] sm:$0xff]  ;;  %v39_v1 = vld [vmem:[#allocation5] sm:$0xff] }
  0x26   :  { %s47_s5 = sshll.u32 %s139_s4, 4  ;;  %38 = vst.msk [vmem:[#allocation7] sm:$0xff] %vm37_vm0, %v36_v0  ;;  %41 = vst.msk [vmem:[#allocation7 + $0x8] sm:$0xff] %vm37_vm0, %v39_v1  ;;  %s48_s5 = int_to_ptr.vmem [resolvable:$true] %s47_s5 }
  0x27   :  { %s109_s6 = scalar_lea.vmem %s48_s5, 256  ;;  %p114_p3 = scmp.lt.s32.totalorder %s48_s5, %s48_s5 }
  0x28   :  { %p110_p2 = scmp.ne.s32.totalorder %s48_s5, %s109_s6  ;;  %p115_p4 = scmp.lt.s32.totalorder %s109_s6, %s109_s6 }
  0x2a   :  { %p116_p5 = por %p115_p4, %p114_p3 }
  0x2c   :  { %p117_p6 = pnand %p116_p5, %p110_p2 }
  0x2e   :  { %120 = shalt.err (!%p117_p6)
}
  0x2f   :  { %s121_s8 = scalar_lea.hbm %s195_s2, 256 }
  0x30   :  { %p122_p7 = scmp.ne.s32.totalorder %s195_s2, %s121_s8  ;;  %p125_p8 = scmp.lt.u32.totalorder %s121_s8, %s195_s2 }
  0x32   :  { %p127_p9 = pnand %p125_p8, %p122_p7 }
  0x34   :  { %130 = shalt.err (!%p127_p9)
}
  0x35   :  { %s140_s13 = smov 128   ;;  %s141_s14 = smov 8  }
  0x36   :  { %53 = dma.vmem_to_hbm [thread:$0]  %s48_s5, 256, %s195_s2, [#allocation4], %s140_s13, %s140_s13, %s141_s14  }
  0x37   :  { %135 = dma.done.wait [#allocation4], 256  }
  0x38   :  { %136 = vsyncadd [#allocation4], 4294967040 }
  0x39   :  { %57 = vsyncpa [#allocation3], 1 }
  0x3a   :  { %58 = vsyncpa [#allocation6], 1 }
  0x3b   :  { %59 = vsyncpa [#allocation4], 1 }

</bundles_post_ra>
